<compile_context>
chip_gen: v7x
topology: tpu7x:2x2x1
jax: 0.10.0
libtpu: 0.0.40
codegen_flags: <defaults>
</compile_context>

<pallas_src>
import functools

import jax
import jax.numpy as jnp
from jax.experimental import pallas as pl
from jax.experimental.pallas import tpu as pltpu

EPS = 1e-5
NUM_CLASSES = 10
OUT_PAD = 128                      # lane-dense padded output width
VMEM_LIMIT = 48 * 1024 * 1024      # safe on v7x (64 MiB phys), roomy on v5e/v6e
PASS23_DEFAULT_TILE = 8192         # passes 2/3 are tiny per-row; use big tiles


def _round_up(n, m):
    return ((n + m - 1) // m) * m


def _tile(b, requested):
    """Batch tile: full batch if it fits in one block, else a multiple of 8 rows."""
    t = _round_up(max(int(requested), 8), 8)
    if t >= b:
        return b, 1, False                 # single block == full dim (always legal)
    g = pl.cdiv(b, t)
    return t, g, (b % t != 0)              # partial edge block -> mask stat rows


def _masked_log_softmax(z, n_valid_cols):
    """log_softmax over the first n_valid_cols columns of a lane-padded block."""
    col = jax.lax.broadcasted_iota(jnp.int32, z.shape, 1)
    zm = jnp.where(col < n_valid_cols, z, -jnp.inf)
    m = jnp.max(zm, axis=1, keepdims=True)
    denom = jnp.sum(jnp.exp(zm - m), axis=1, keepdims=True)
    return (z - m) - jnp.log(denom)        # padded cols hold junk; sliced off in JAX


# ---------------------------------------------------------------------------
# Pass 1: fc1 + relu, per-tile partial sum / sumsq for bn1 (parallel grid).
# ---------------------------------------------------------------------------
def _fc1_stats_kernel(x_ref, w1_ref, b1_ref, h1_ref, sum_ref, sq_ref, *,
                      tile_b, n_valid, mask_rows):
    i = pl.program_id(0)
    x = x_ref[...].astype(jnp.bfloat16)      # cast in VMEM; free filler under DMA
    h = jnp.dot(x, w1_ref[...], preferred_element_type=jnp.float32)
    h = jnp.maximum(h + b1_ref[...], 0.0)
    h1_ref[...] = h
    if mask_rows:
        row = jax.lax.broadcasted_iota(jnp.int32, h.shape, 0) + i * tile_b
        h = jnp.where(row < n_valid, h, 0.0)
    sum_ref[...] = jnp.sum(h, axis=0, keepdims=True)
    sq_ref[...] = jnp.sum(h * h, axis=0, keepdims=True)


# ---------------------------------------------------------------------------
# Pass 2: (bn1-folded) fc2 + relu, per-tile partial sum / sumsq for bn2.
# ---------------------------------------------------------------------------
def _fc_relu_stats_kernel(h_ref, w_ref, b_ref, o_ref, sum_ref, sq_ref, *,
                          tile_b, n_valid, mask_rows):
    i = pl.program_id(0)
    o = jnp.dot(h_ref[...], w_ref[...], preferred_element_type=jnp.float32)
    o = jnp.maximum(o + b_ref[...], 0.0)
    o_ref[...] = o
    if mask_rows:
        row = jax.lax.broadcasted_iota(jnp.int32, o.shape, 0) + i * tile_b
        o = jnp.where(row < n_valid, o, 0.0)
    sum_ref[...] = jnp.sum(o, axis=0, keepdims=True)
    sq_ref[...] = jnp.sum(o * o, axis=0, keepdims=True)


# ---------------------------------------------------------------------------
# Pass 3: (bn2-folded) fc3 (lane-padded) + masked log_softmax, lane-dense store.
# ---------------------------------------------------------------------------
def _fc_logsoftmax_kernel(h_ref, w_ref, b_ref, o_ref):
    z = jnp.dot(h_ref[...], w_ref[...], preferred_element_type=jnp.float32) + b_ref[...]
    o_ref[...] = _masked_log_softmax(z, NUM_CLASSES)


# ---------------------------------------------------------------------------
# bn=False: single fully fused, fully parallel kernel.
# ---------------------------------------------------------------------------
def _fc_nobn_kernel(x_ref, w1_ref, b1_ref, w2_ref, b2_ref, w3_ref, b3_ref, o_ref):
    x = x_ref[...].astype(jnp.bfloat16)
    h = jnp.dot(x, w1_ref[...], preferred_element_type=jnp.float32)
    h = jnp.maximum(h + b1_ref[...], 0.0)
    h = jnp.dot(h, w2_ref[...], preferred_element_type=jnp.float32)
    h = jnp.maximum(h + b2_ref[...], 0.0)
    z = jnp.dot(h, w3_ref[...], preferred_element_type=jnp.float32) + b3_ref[...]
    o_ref[...] = _masked_log_softmax(z, NUM_CLASSES)


def _bn_fold(sum_parts, sq_parts, gamma, beta, n, w, b):
    """Reduce per-tile stats and fold the training-mode BN affine into (w, b)."""
    s = jnp.sum(sum_parts, axis=0)                      # (1, F)
    ss = jnp.sum(sq_parts, axis=0)                      # (1, F)
    mean = s / n
    var = jnp.maximum(ss / n - mean * mean, 0.0)        # biased (training-mode) var
    scale = gamma * jax.lax.rsqrt(var + EPS)            # (1, F)
    shift = beta - mean * scale                         # (1, F)
    w_f = w * scale.reshape(-1, 1)                      # (F, Fout)
    b_f = shift @ w + b                                 # (1, Fout)
    return w_f, b_f


@functools.partial(jax.jit, static_argnames=("bn", "tile_b", "tile_b23"))
def fc_forward(x, params, *, bn=True, tile_b=2048, tile_b23=PASS23_DEFAULT_TILE):
    """x: (B, C, H, W) or (B, features). Returns (B, 10) log-probabilities."""
    (w1, b1, w2, b2, w3, b3, g1, be1, g2, be2) = params
    B = x.shape[0]
    in_features, nH = w1.shape

    x2 = x.reshape(B, -1)                         # stays f32; cast to bf16 in-kernel
    w1_bf = w1.astype(jnp.bfloat16)

    tb1, grid1, mask1 = _tile(B, tile_b)          # pass 1 (HBM-bound on x)
    tb2, grid2, mask2 = _tile(B, tile_b23)        # passes 2 & 3 (tiny per-row)

    # Lane-dense fc3: pad weights/bias to OUT_PAD columns (extra cols are zero).
    w3p = jnp.zeros((NUM_CLASSES, OUT_PAD), jnp.float32).at[:, :NUM_CLASSES].set(w3)
    b3p = jnp.zeros((1, OUT_PAD), jnp.float32).at[:, :NUM_CLASSES].set(b3)

    cp_par = pltpu.CompilerParams(dimension_semantics=("parallel",),
                                  vmem_limit_bytes=VMEM_LIMIT)

    def row_spec(tb, width):
        return pl.BlockSpec((tb, width), lambda i: (i, 0))

    def full(shape):
        nd = len(shape)
        return pl.BlockSpec(shape, lambda i, _nd=nd: (0,) * _nd)

    def part_spec(width):
        # per-tile partial stats: (grid, 1, width) array, one (1, width) block per i
        return pl.BlockSpec((None, 1, width), lambda i: (i, 0, 0))

    if not bn:
        out = pl.pallas_call(
            _fc_nobn_kernel,
            out_shape=jax.ShapeDtypeStruct((B, OUT_PAD), jnp.float32),
            grid=(grid1,),
            in_specs=[row_spec(tb1, in_features), full(w1_bf.shape), full(b1.shape),
                      full(w2.shape), full(b2.shape), full(w3p.shape), full(b3p.shape)],
            out_specs=row_spec(tb1, OUT_PAD),
            compiler_params=cp_par,
        )(x2, w1_bf, b1, w2, b2, w3p, b3p)
        return out[:, :NUM_CLASSES]

    # ---- pass 1: fc1 + relu + per-tile bn1 partial stats (parallel batch grid) ----
    h1, s1p, ss1p = pl.pallas_call(
        functools.partial(_fc1_stats_kernel, tile_b=tb1, n_valid=B, mask_rows=mask1),
        out_shape=(jax.ShapeDtypeStruct((B, nH), jnp.float32),
                   jax.ShapeDtypeStruct((grid1, 1, nH), jnp.float32),
                   jax.ShapeDtypeStruct((grid1, 1, nH), jnp.float32)),
        grid=(grid1,),
        in_specs=[row_spec(tb1, in_features), full(w1_bf.shape), full(b1.shape)],
        out_specs=(row_spec(tb1, nH), part_spec(nH), part_spec(nH)),
        compiler_params=cp_par,
    )(x2, w1_bf, b1)

    # fold bn1 into (w2, b2): relu(fc1) -> bn1 -> fc2  ==  h1 @ w2f + b2f
    w2f, b2f = _bn_fold(s1p, ss1p, g1, be1, B, w2, b2)

    # ---- pass 2: fc2 + relu + per-tile bn2 partial stats ----
    h2, s2p, ss2p = pl.pallas_call(
        functools.partial(_fc_relu_stats_kernel, tile_b=tb2, n_valid=B, mask_rows=mask2),
        out_shape=(jax.ShapeDtypeStruct((B, NUM_CLASSES), jnp.float32),
                   jax.ShapeDtypeStruct((grid2, 1, NUM_CLASSES), jnp.float32),
                   jax.ShapeDtypeStruct((grid2, 1, NUM_CLASSES), jnp.float32)),
        grid=(grid2,),
        in_specs=[row_spec(tb2, nH), full(w2f.shape), full(b2f.shape)],
        out_specs=(row_spec(tb2, NUM_CLASSES),
                   part_spec(NUM_CLASSES), part_spec(NUM_CLASSES)),
        compiler_params=cp_par,
    )(h1, w2f, b2f)

    # fold bn2 into the lane-padded (w3, b3)
    w3f, b3f = _bn_fold(s2p, ss2p, g2, be2, B, w3p, b3p)

    # ---- pass 3: fc3 + log_softmax (parallel, lane-dense output) ----
    out = pl.pallas_call(
        _fc_logsoftmax_kernel,
        out_shape=jax.ShapeDtypeStruct((B, OUT_PAD), jnp.float32),
        grid=(grid2,),
        in_specs=[row_spec(tb2, NUM_CLASSES), full(w3f.shape), full(b3f.shape)],
        out_specs=row_spec(tb2, OUT_PAD),
        compiler_params=cp_par,
    )(h2, w3f, b3f)

    return out[:, :NUM_CLASSES]


# ---------------------------------------------------------------------------
# Pure-JAX reference (same forward semantics; fc1 uses the same bf16 operands)
# ---------------------------------------------------------------------------
def fc_reference(x, params, *, bn=True):
    (w1, b1, w2, b2, w3, b3, g1, be1, g2, be2) = params
    B = x.shape[0]
    h = x.reshape(B, -1)
    h = jnp.dot(h.astype(jnp.bfloat16), w1.astype(jnp.bfloat16),
                preferred_element_type=jnp.float32) + b1
    h = jnp.maximum(h, 0.0)
    if bn:
        mu = jnp.mean(h, axis=0, keepdims=True)
        var = jnp.mean((h - mu) ** 2, axis=0, keepdims=True)
        h = (h - mu) * jax.lax.rsqrt(var + EPS) * g1 + be1
    h = jnp.maximum(jnp.dot(h, w2) + b2, 0.0)
    if bn:
        mu = jnp.mean(h, axis=0, keepdims=True)
        var = jnp.mean((h - mu) ** 2, axis=0, keepdims=True)
        h = (h - mu) * jax.lax.rsqrt(var + EPS) * g2 + be2
    z = jnp.dot(h, w3) + b3
    return jax.nn.log_softmax(z, axis=1)


def init_params(key, in_features, n_hidden):
    """PyTorch-style uniform(+/- 1/sqrt(fan_in)) init; BN gamma=1, beta=0."""
    ks = jax.random.split(key, 6)

    def lin(kw, kb, fan_in, fan_out):
        bound = 1.0 / (fan_in ** 0.5)
        w = jax.random.uniform(kw, (fan_in, fan_out), jnp.float32, -bound, bound)
        b = jax.random.uniform(kb, (1, fan_out), jnp.float32, -bound, bound)
        return w, b

    w1, b1 = lin(ks[0], ks[1], in_features, n_hidden)
    w2, b2 = lin(ks[2], ks[3], n_hidden, NUM_CLASSES)
    w3, b3 = lin(ks[4], ks[5], NUM_CLASSES, NUM_CLASSES)

    g1 = jnp.ones((1, n_hidden), jnp.float32)
    be1 = jnp.zeros((1, n_hidden), jnp.float32)
    g2 = jnp.ones((1, NUM_CLASSES), jnp.float32)
    be2 = jnp.zeros((1, NUM_CLASSES), jnp.float32)
    return (w1, b1, w2, b2, w3, b3, g1, be1, g2, be2)


# TODO(synk): BatchNorm1d running_mean/running_var buffer updates (training-mode
# side effect in PyTorch) are not produced; only the forward activations are.

if __name__ == "__main__":
    key = jax.random.PRNGKey(0)
    k_x, k_p, k_x2 = jax.random.split(key, 3)

    # dataset='mnist' -> 784 = 1*28*28; small batch, nHidden=32
    batch, n_hidden = 8, 32
    x = jax.random.normal(k_x, (batch, 1, 28, 28), jnp.float32)
    params = init_params(k_p, 784, n_hidden)

    # bn=True, single tile per pass
    out = fc_forward(x, params, bn=True)
    jax.block_until_ready(out)
    assert out.shape == (batch, NUM_CLASSES)
    ref = fc_reference(x, params, bn=True)
    assert bool(jnp.allclose(out, ref, atol=2e-3, rtol=2e-3))
    row_sums = jnp.sum(jnp.exp(out), axis=1)
    assert bool(jnp.all(jnp.abs(row_sums - 1.0) < 1e-4))

    # bn=True, multi-tile + ragged batch (exercises partial edge blocks, row
    # masking, and the cross-tile partial-stat reduction on every pass)
    batch2 = 44
    x_big = jax.random.normal(k_x2, (batch2, 1, 28, 28), jnp.float32)
    out2 = fc_forward(x_big, params, bn=True, tile_b=16, tile_b23=16)
    jax.block_until_ready(out2)
    ref2 = fc_reference(x_big, params, bn=True)
    assert out2.shape == (batch2, NUM_CLASSES)
    assert bool(jnp.allclose(out2, ref2, atol=2e-3, rtol=2e-3))

    # bn=False fused path
    out3 = fc_forward(x, params, bn=False)
    jax.block_until_ready(out3)
    ref3 = fc_reference(x, params, bn=False)
    assert bool(jnp.allclose(out3, ref3, atol=2e-3, rtol=2e-3))

    print("KERNEL_OK")
</pallas_src>

<mosaic_0001>
module attributes {stable_mosaic.version = 11 : i64} {
  func.func @_fc1_stats_kernel(%arg0: i32, %arg1: memref<8x784xf32, #tpu.memory_space<vmem>>, %arg2: memref<784x32xbf16, #tpu.memory_space<vmem>>, %arg3: memref<1x32xf32, #tpu.memory_space<vmem>>, %arg4: memref<8x32xf32, #tpu.memory_space<vmem>>, %arg5: memref<1x1x32xf32, #tpu.memory_space<vmem>>, %arg6: memref<1x1x32xf32, #tpu.memory_space<vmem>>) attributes {dimension_semantics = [#tpu.dimension_semantics<parallel>], iteration_bounds = array<i64: 1>, scalar_prefetch = 0 : i64, scratch_operands = 0 : i64, tpu.core_type = #tpu.core_type<tc>, window_params = [{transform_indices = @transform_0, window_bounds = array<i64: 8, 784>}, {pipeline_mode = #tpu.pipeline_mode<synchronous>, transform_indices = @transform_1, window_bounds = array<i64: 784, 32>}, {pipeline_mode = #tpu.pipeline_mode<synchronous>, transform_indices = @transform_2, window_bounds = array<i64: 1, 32>}, {transform_indices = @transform_3, window_bounds = array<i64: 8, 32>}, {transform_indices = @transform_4, window_bounds = array<i64: 1, 1, 32>}, {transform_indices = @transform_5, window_bounds = array<i64: 1, 1, 32>}]} {
    %c0 = arith.constant 0 : index
    %c0_0 = arith.constant 0 : index
    %0 = vector.load %arg1[%c0, %c0_0] : memref<8x784xf32, #tpu.memory_space<vmem>>, vector<8x784xf32>
    %1 = arith.truncf %0 : vector<8x784xf32> to vector<8x784xbf16>
    %c0_1 = arith.constant 0 : index
    %c0_2 = arith.constant 0 : index
    %2 = vector.load %arg2[%c0_1, %c0_2] : memref<784x32xbf16, #tpu.memory_space<vmem>>, vector<784x32xbf16>
    %cst = arith.constant dense<0.000000e+00> : vector<8x32xf32>
    %3 = tpu.matmul %1, %2, %cst {dimension_numbers = #tpu.dot_dimension_numbers<[1], [0], [0], [1], [0, 0, 1, 1], [], []>} : vector<8x784xbf16>, vector<784x32xbf16>, vector<8x32xf32> -> vector<8x32xf32>
    %c0_3 = arith.constant 0 : index
    %c0_4 = arith.constant 0 : index
    %4 = vector.load %arg3[%c0_3, %c0_4] : memref<1x32xf32, #tpu.memory_space<vmem>>, vector<1x32xf32>
    %5 = vector.broadcast %4 : vector<1x32xf32> to vector<8x32xf32>
    %6 = arith.addf %3, %5 : vector<8x32xf32>
    %cst_5 = arith.constant 0.000000e+00 : f32
    %7 = vector.broadcast %cst_5 : f32 to vector<8x32xf32>
    %8 = arith.maximumf %6, %7 : vector<8x32xf32>
    %c0_6 = arith.constant 0 : index
    %c0_7 = arith.constant 0 : index
    %9 = vector.load %arg4[%c0_6, %c0_7] : memref<8x32xf32, #tpu.memory_space<vmem>>, vector<8x32xf32>
    tpu.vector_store %arg4[%c0_6, %c0_7], %8 {strides = array<i32>} : memref<8x32xf32, #tpu.memory_space<vmem>>, vector<8x32xf32>,
    %cst_8 = arith.constant dense<0.000000e+00> : vector<32xf32>
    %10 = vector.multi_reduction <add>, %8, %cst_8 [0] : vector<8x32xf32> to vector<32xf32>
    %11 = vector.shape_cast %10 : vector<32xf32> to vector<1x32xf32>
    %c0_9 = arith.constant 0 : index
    %c0_10 = arith.constant 0 : index
    %c0_11 = arith.constant 0 : index
    %12 = vector.load %arg5[%c0_9, %c0_10, %c0_11] : memref<1x1x32xf32, #tpu.memory_space<vmem>>, vector<1x1x32xf32>
    %13 = vector.shape_cast %12 : vector<1x1x32xf32> to vector<1x32xf32>
    %14 = vector.shape_cast %11 : vector<1x32xf32> to vector<1x1x32xf32>
    tpu.vector_store %arg5[%c0_9, %c0_10, %c0_11], %14 {strides = array<i32>} : memref<1x1x32xf32, #tpu.memory_space<vmem>>, vector<1x1x32xf32>,
    %15 = arith.mulf %8, %8 : vector<8x32xf32>
    %cst_12 = arith.constant dense<0.000000e+00> : vector<32xf32>
    %16 = vector.multi_reduction <add>, %15, %cst_12 [0] : vector<8x32xf32> to vector<32xf32>
    %17 = vector.shape_cast %16 : vector<32xf32> to vector<1x32xf32>
    %c0_13 = arith.constant 0 : index
    %c0_14 = arith.constant 0 : index
    %c0_15 = arith.constant 0 : index
    %18 = vector.load %arg6[%c0_13, %c0_14, %c0_15] : memref<1x1x32xf32, #tpu.memory_space<vmem>>, vector<1x1x32xf32>
    %19 = vector.shape_cast %18 : vector<1x1x32xf32> to vector<1x32xf32>
    %20 = vector.shape_cast %17 : vector<1x32xf32> to vector<1x1x32xf32>
    tpu.vector_store %arg6[%c0_13, %c0_14, %c0_15], %20 {strides = array<i32>} : memref<1x1x32xf32, #tpu.memory_space<vmem>>, vector<1x1x32xf32>,
    return
  }
  func.func @transform_0(%arg0: i32) -> (i32, i32) {
    %c0_i32 = arith.constant 0 : i32
    %c0_i32_0 = arith.constant 0 : i32
    return %arg0, %c0_i32 : i32, i32
  }
  func.func @transform_1(%arg0: i32) -> (i32, i32) {
    %c0_i32 = arith.constant 0 : i32
    %c0_i32_0 = arith.constant 0 : i32
    %c0_i32_1 = arith.constant 0 : i32
    return %c0_i32, %c0_i32_0 : i32, i32
  }
  func.func @transform_2(%arg0: i32) -> (i32, i32) {
    %c0_i32 = arith.constant 0 : i32
    %c0_i32_0 = arith.constant 0 : i32
    %c0_i32_1 = arith.constant 0 : i32
    return %c0_i32, %c0_i32_0 : i32, i32
  }
  func.func @transform_3(%arg0: i32) -> (i32, i32) {
    %c0_i32 = arith.constant 0 : i32
    %c0_i32_0 = arith.constant 0 : i32
    return %arg0, %c0_i32 : i32, i32
  }
  func.func @transform_4(%arg0: i32) -> (i32, i32, i32) {
    %c0_i32 = arith.constant 0 : i32
    %c0_i32_0 = arith.constant 0 : i32
    %c0_i32_1 = arith.constant 0 : i32
    return %arg0, %c0_i32, %c0_i32_0 : i32, i32, i32
  }
  func.func @transform_5(%arg0: i32) -> (i32, i32, i32) {
    %c0_i32 = arith.constant 0 : i32
    %c0_i32_0 = arith.constant 0 : i32
    %c0_i32_1 = arith.constant 0 : i32
    return %arg0, %c0_i32, %c0_i32_0 : i32, i32, i32
  }
}

module attributes {stable_mosaic.version = 11 : i64} {
  func.func @_fc_relu_stats_kernel(%arg0: i32, %arg1: memref<8x32xf32, #tpu.memory_space<vmem>>, %arg2: memref<32x10xf32, #tpu.memory_space<vmem>>, %arg3: memref<1x10xf32, #tpu.memory_space<vmem>>, %arg4: memref<8x10xf32, #tpu.memory_space<vmem>>, %arg5: memref<1x1x10xf32, #tpu.memory_space<vmem>>, %arg6: memref<1x1x10xf32, #tpu.memory_space<vmem>>) attributes {dimension_semantics = [#tpu.dimension_semantics<parallel>], iteration_bounds = array<i64: 1>, scalar_prefetch = 0 : i64, scratch_operands = 0 : i64, tpu.core_type = #tpu.core_type<tc>, window_params = [{transform_indices = @transform_0, window_bounds = array<i64: 8, 32>}, {pipeline_mode = #tpu.pipeline_mode<synchronous>, transform_indices = @transform_1, window_bounds = array<i64: 32, 10>}, {pipeline_mode = #tpu.pipeline_mode<synchronous>, transform_indices = @transform_2, window_bounds = array<i64: 1, 10>}, {transform_indices = @transform_3, window_bounds = array<i64: 8, 10>}, {transform_indices = @transform_4, window_bounds = array<i64: 1, 1, 10>}, {transform_indices = @transform_5, window_bounds = array<i64: 1, 1, 10>}]} {
    %c0 = arith.constant 0 : index
    %c0_0 = arith.constant 0 : index
    %0 = vector.load %arg1[%c0, %c0_0] : memref<8x32xf32, #tpu.memory_space<vmem>>, vector<8x32xf32>
    %c0_1 = arith.constant 0 : index
    %c0_2 = arith.constant 0 : index
    %1 = vector.load %arg2[%c0_1, %c0_2] : memref<32x10xf32, #tpu.memory_space<vmem>>, vector<32x10xf32>
    %cst = arith.constant dense<0.000000e+00> : vector<8x10xf32>
    %2 = tpu.matmul %0, %1, %cst {dimension_numbers = #tpu.dot_dimension_numbers<[1], [0], [0], [1], [0, 0, 1, 1], [], []>} : vector<8x32xf32>, vector<32x10xf32>, vector<8x10xf32> -> vector<8x10xf32>
    %c0_3 = arith.constant 0 : index
    %c0_4 = arith.constant 0 : index
    %3 = vector.load %arg3[%c0_3, %c0_4] : memref<1x10xf32, #tpu.memory_space<vmem>>, vector<1x10xf32>
    %4 = vector.broadcast %3 : vector<1x10xf32> to vector<8x10xf32>
    %5 = arith.addf %2, %4 : vector<8x10xf32>
    %cst_5 = arith.constant 0.000000e+00 : f32
    %6 = vector.broadcast %cst_5 : f32 to vector<8x10xf32>
    %7 = arith.maximumf %5, %6 : vector<8x10xf32>
    %c0_6 = arith.constant 0 : index
    %c0_7 = arith.constant 0 : index
    %8 = vector.load %arg4[%c0_6, %c0_7] : memref<8x10xf32, #tpu.memory_space<vmem>>, vector<8x10xf32>
    tpu.vector_store %arg4[%c0_6, %c0_7], %7 {strides = array<i32>} : memref<8x10xf32, #tpu.memory_space<vmem>>, vector<8x10xf32>,
    %cst_8 = arith.constant dense<0.000000e+00> : vector<10xf32>
    %9 = vector.multi_reduction <add>, %7, %cst_8 [0] : vector<8x10xf32> to vector<10xf32>
    %10 = vector.shape_cast %9 : vector<10xf32> to vector<1x10xf32>
    %c0_9 = arith.constant 0 : index
    %c0_10 = arith.constant 0 : index
    %c0_11 = arith.constant 0 : index
    %11 = vector.load %arg5[%c0_9, %c0_10, %c0_11] : memref<1x1x10xf32, #tpu.memory_space<vmem>>, vector<1x1x10xf32>
    %12 = vector.shape_cast %11 : vector<1x1x10xf32> to vector<1x10xf32>
    %13 = vector.shape_cast %10 : vector<1x10xf32> to vector<1x1x10xf32>
    tpu.vector_store %arg5[%c0_9, %c0_10, %c0_11], %13 {strides = array<i32>} : memref<1x1x10xf32, #tpu.memory_space<vmem>>, vector<1x1x10xf32>,
    %14 = arith.mulf %7, %7 : vector<8x10xf32>
    %cst_12 = arith.constant dense<0.000000e+00> : vector<10xf32>
    %15 = vector.multi_reduction <add>, %14, %cst_12 [0] : vector<8x10xf32> to vector<10xf32>
    %16 = vector.shape_cast %15 : vector<10xf32> to vector<1x10xf32>
    %c0_13 = arith.constant 0 : index
    %c0_14 = arith.constant 0 : index
    %c0_15 = arith.constant 0 : index
    %17 = vector.load %arg6[%c0_13, %c0_14, %c0_15] : memref<1x1x10xf32, #tpu.memory_space<vmem>>, vector<1x1x10xf32>
    %18 = vector.shape_cast %17 : vector<1x1x10xf32> to vector<1x10xf32>
    %19 = vector.shape_cast %16 : vector<1x10xf32> to vector<1x1x10xf32>
    tpu.vector_store %arg6[%c0_13, %c0_14, %c0_15], %19 {strides = array<i32>} : memref<1x1x10xf32, #tpu.memory_space<vmem>>, vector<1x1x10xf32>,
    return
  }
  func.func @transform_0(%arg0: i32) -> (i32, i32) {
    %c0_i32 = arith.constant 0 : i32
    %c0_i32_0 = arith.constant 0 : i32
    return %arg0, %c0_i32 : i32, i32
  }
  func.func @transform_1(%arg0: i32) -> (i32, i32) {
    %c0_i32 = arith.constant 0 : i32
    %c0_i32_0 = arith.constant 0 : i32
    %c0_i32_1 = arith.constant 0 : i32
    return %c0_i32, %c0_i32_0 : i32, i32
  }
  func.func @transform_2(%arg0: i32) -> (i32, i32) {
    %c0_i32 = arith.constant 0 : i32
    %c0_i32_0 = arith.constant 0 : i32
    %c0_i32_1 = arith.constant 0 : i32
    return %c0_i32, %c0_i32_0 : i32, i32
  }
  func.func @transform_3(%arg0: i32) -> (i32, i32) {
    %c0_i32 = arith.constant 0 : i32
    %c0_i32_0 = arith.constant 0 : i32
    return %arg0, %c0_i32 : i32, i32
  }
  func.func @transform_4(%arg0: i32) -> (i32, i32, i32) {
    %c0_i32 = arith.constant 0 : i32
    %c0_i32_0 = arith.constant 0 : i32
    %c0_i32_1 = arith.constant 0 : i32
    return %arg0, %c0_i32, %c0_i32_0 : i32, i32, i32
  }
  func.func @transform_5(%arg0: i32) -> (i32, i32, i32) {
    %c0_i32 = arith.constant 0 : i32
    %c0_i32_0 = arith.constant 0 : i32
    %c0_i32_1 = arith.constant 0 : i32
    return %arg0, %c0_i32, %c0_i32_0 : i32, i32, i32
  }
}

module attributes {stable_mosaic.version = 11 : i64} {
  func.func @_fc_logsoftmax_kernel(%arg0: i32, %arg1: memref<8x10xf32, #tpu.memory_space<vmem>>, %arg2: memref<10x128xf32, #tpu.memory_space<vmem>>, %arg3: memref<1x128xf32, #tpu.memory_space<vmem>>, %arg4: memref<8x128xf32, #tpu.memory_space<vmem>>) attributes {dimension_semantics = [#tpu.dimension_semantics<parallel>], iteration_bounds = array<i64: 1>, scalar_prefetch = 0 : i64, scratch_operands = 0 : i64, tpu.core_type = #tpu.core_type<tc>, window_params = [{transform_indices = @transform_0, window_bounds = array<i64: 8, 10>}, {pipeline_mode = #tpu.pipeline_mode<synchronous>, transform_indices = @transform_1, window_bounds = array<i64: 10, 128>}, {pipeline_mode = #tpu.pipeline_mode<synchronous>, transform_indices = @transform_2, window_bounds = array<i64: 1, 128>}, {transform_indices = @transform_3, window_bounds = array<i64: 8, 128>}]} {
    %c0 = arith.constant 0 : index
    %c0_0 = arith.constant 0 : index
    %0 = vector.load %arg1[%c0, %c0_0] : memref<8x10xf32, #tpu.memory_space<vmem>>, vector<8x10xf32>
    %c0_1 = arith.constant 0 : index
    %c0_2 = arith.constant 0 : index
    %1 = vector.load %arg2[%c0_1, %c0_2] : memref<10x128xf32, #tpu.memory_space<vmem>>, vector<10x128xf32>
    %cst = arith.constant dense<0.000000e+00> : vector<8x128xf32>
    %2 = tpu.matmul %0, %1, %cst {dimension_numbers = #tpu.dot_dimension_numbers<[1], [0], [0], [1], [0, 0, 1, 1], [], []>} : vector<8x10xf32>, vector<10x128xf32>, vector<8x128xf32> -> vector<8x128xf32>
    %c0_3 = arith.constant 0 : index
    %c0_4 = arith.constant 0 : index
    %3 = vector.load %arg3[%c0_3, %c0_4] : memref<1x128xf32, #tpu.memory_space<vmem>>, vector<1x128xf32>
    %4 = vector.broadcast %3 : vector<1x128xf32> to vector<8x128xf32>
    %5 = arith.addf %2, %4 : vector<8x128xf32>
    %6 = tpu.iota {dimensions = array<i32: 1>} : vector<8x128xi32>
    %c10_i32 = arith.constant 10 : i32
    %7 = vector.broadcast %c10_i32 : i32 to vector<8x128xi32>
    %8 = arith.cmpi slt, %6, %7 : vector<8x128xi32>
    %cst_5 = arith.constant 0xFF800000 : f32
    %9 = vector.broadcast %cst_5 : f32 to vector<8x128xf32>
    %10 = arith.select %8, %5, %9 : vector<8x128xi1>, vector<8x128xf32>
    %cst_6 = arith.constant dense<0xFF800000> : vector<8xf32>
    %11 = vector.multi_reduction <maximumf>, %10, %cst_6 [1] : vector<8x128xf32> to vector<8xf32>
    %12 = vector.shape_cast %11 : vector<8xf32> to vector<8x1xf32>
    %13 = vector.broadcast %12 : vector<8x1xf32> to vector<8x128xf32>
    %14 = arith.subf %10, %13 : vector<8x128xf32>
    %15 = math.exp %14 : vector<8x128xf32>
    %cst_7 = arith.constant dense<0.000000e+00> : vector<8xf32>
    %16 = vector.multi_reduction <add>, %15, %cst_7 [1] : vector<8x128xf32> to vector<8xf32>
    %17 = vector.shape_cast %16 : vector<8xf32> to vector<8x1xf32>
    %18 = vector.broadcast %12 : vector<8x1xf32> to vector<8x128xf32>
    %19 = arith.subf %5, %18 : vector<8x128xf32>
    %20 = math.log %17 : vector<8x1xf32>
    %21 = vector.broadcast %20 : vector<8x1xf32> to vector<8x128xf32>
    %22 = arith.subf %19, %21 : vector<8x128xf32>
    %c0_8 = arith.constant 0 : index
    %c0_9 = arith.constant 0 : index
    %23 = vector.load %arg4[%c0_8, %c0_9] : memref<8x128xf32, #tpu.memory_space<vmem>>, vector<8x128xf32>
    tpu.vector_store %arg4[%c0_8, %c0_9], %22 {strides = array<i32>} : memref<8x128xf32, #tpu.memory_space<vmem>>, vector<8x128xf32>,
    return
  }
  func.func @transform_0(%arg0: i32) -> (i32, i32) {
    %c0_i32 = arith.constant 0 : i32
    %c0_i32_0 = arith.constant 0 : i32
    return %arg0, %c0_i32 : i32, i32
  }
  func.func @transform_1(%arg0: i32) -> (i32, i32) {
    %c0_i32 = arith.constant 0 : i32
    %c0_i32_0 = arith.constant 0 : i32
    %c0_i32_1 = arith.constant 0 : i32
    return %c0_i32, %c0_i32_0 : i32, i32
  }
  func.func @transform_2(%arg0: i32) -> (i32, i32) {
    %c0_i32 = arith.constant 0 : i32
    %c0_i32_0 = arith.constant 0 : i32
    %c0_i32_1 = arith.constant 0 : i32
    return %c0_i32, %c0_i32_0 : i32, i32
  }
  func.func @transform_3(%arg0: i32) -> (i32, i32) {
    %c0_i32 = arith.constant 0 : i32
    %c0_i32_0 = arith.constant 0 : i32
    return %arg0, %c0_i32 : i32, i32
  }
}

</mosaic_0001>

<bundles_post_ra>
// kernel: fc_forward.4
= control target key start
LH: loop header
LB: loop body
LE: loop exit
PB: predicated region body
PF: predicated region fallthrough
CT: control target
= control target key end

     0   :  { %v163_v0 = vmov 0.0|0.0   ;;  %vm164_vm0 = vmmov 0   ;;  %v165_v4 = vmov 0.0   ;;  %vm29_vm1 = vcmask 261120   ;;  %s223_s1 = inlined_call_operand.vmem [shape: f32[32,10], index: 1, kind: input, shape index: {}]   ;;  %s224_s0 = inlined_call_operand.vmem [shape: f32[8,32], index: 0, kind: input, shape index: {}]   ;;  %s225_s2 = inlined_call_operand.vmem [shape: f32[1,10], index: 2, kind: input, shape index: {}]   ;;  %s226_s3 = inlined_call_operand.vmem [shape: f32[8,10], index: 3, kind: output, shape index: {0}]   ;;  %s227_s4 = inlined_call_operand.vmem [shape: f32[1,1,10], index: 4, kind: output, shape index: {1}]   ;;  %s228_s5 = inlined_call_operand.vmem [shape: f32[1,1,10], index: 5, kind: output, shape index: {2}]  }
   0x1   :  { %154 = vmatprep.subr.bf16.mxu0 %v163_v0  ;;  %v18_v1 = vld [vmem:[%s223_s1] sm:$0xff]  ;;  %v19_v2 = vld [vmem:[%s223_s1 + $0x8] sm:$0xff]  ;;  %v20_v3 = vld [vmem:[%s223_s1 + $0x10] sm:$0xff]  ;;  %151 = vmatprep.mubr.msk.f32.mxu0 %vm164_vm0, %v165_v4  ;;  %vm104_vm2 = vcmask 80896   ;;  %vm113_vm3 = vcmask 73728  }
   0x2   :  { %v155_v5 = vpack.c.bf16 %v19_v2, %v18_v1  ;;  %v21_v6 = vld [vmem:[%s223_s1 + $0x18] sm:$0xff]  ;;  %v17_v8 = vld [vmem:[%s224_s0] sm:$0xff] }
   0x3   :  { %v158_v7 = vpack.c.bf16 %v21_v6, %v20_v3  ;;  %v136_v9 = vld [vmem:[%s225_s2] ss:$0 sm:$0xff] }
   0x4   :  { %156 = vmatpush3.bf16.msra.mxu0 %v155_v5 }
   0x5   :  { %157 = vmatprep.subr.bf16.mxu0 %v163_v0 }
   0x8   :  { %159 = vmatpush3.bf16.msra.mxu0 %v158_v7 }
   0xb   :  { %152 = vmatmul.mubr.msk.f32.vlgmr.msra.gmra.mrb[0].mxu0 %vm29_vm1, %v17_v8 }
  0xde   :  { %v99_v10 = vpop.f32.mrb[0].mxu0 }
  0xdf   :  { %v100_v11 = vadd.f32 %v136_v9, %v99_v10  ;;  %v153_v12 = vpop.f32.mrb[1].mxu0 }
  0xe1   :  { %v103_v13 = vmax.f32 %v100_v11, 0.0 }
  0xe3   :  { %105 = vst.msk [vmem:[%s226_s3] sm:$0xff] %vm104_vm2, %v103_v13  ;;  %v106_v14 = vsel %vm104_vm2, %v103_v13, 0.0  ;;  %v115_v15 = vmul.f32 %v103_v13, %v103_v13 }
  0xe4   :  { %v107_v16 = vrot.slane %v106_v14, 4 }
  0xe5   :  { %v116_v17 = vsel %vm104_vm2, %v115_v15, 0.0 }
  0xe6   :  { %v108_v18 = vadd.f32 %v107_v16, %v106_v14  ;;  %v117_v19 = vrot.slane %v116_v17, 4 }
  0xe8   :  { %v109_v20 = vrot.slane %v108_v18, 2  ;;  %v118_v21 = vadd.f32 %v117_v19, %v116_v17 }
  0xea   :  { %v110_v22 = vadd.f32 %v109_v20, %v108_v18  ;;  %v119_v23 = vrot.slane %v118_v21, 2 }
  0xec   :  { %v111_v24 = vrot.slane %v110_v22, 1  ;;  %v120_v25 = vadd.f32 %v119_v23, %v118_v21 }
  0xee   :  { %v112_v26 = vadd.f32 %v111_v24, %v110_v22  ;;  %v121_v27 = vrot.slane %v120_v25, 1 }
  0xf0   :  { %114 = vst.msk [vmem:[%s227_s4] sm:$0x1] %vm113_vm3, %v112_v26  ;;  %v122_v28 = vadd.f32 %v121_v27, %v120_v25 }
  0xf2   :  { %123 = vst.msk [vmem:[%s228_s5] sm:$0x1] %vm113_vm3, %v122_v28 }

// kernel: fc_forward.3
= control target key start
LH: loop header
LB: loop body
LE: loop exit
PB: predicated region body
PF: predicated region fallthrough
CT: control target
= control target key end

     0   :  { %v804_v44 = vmov 0.0   ;;  %vm805_vm0 = vmmov 0   ;;  %vm431_vm1 = vcmask 130048   ;;  %vm596_vm2 = vcmask 261120   ;;  %s1016_s1 = inlined_call_operand.vmem [shape: bf16[784,32], index: 1, kind: input, shape index: {}]   ;;  %s1017_s0 = inlined_call_operand.vmem [shape: f32[8,784], index: 0, kind: input, shape index: {}]   ;;  %s1018_s2 = inlined_call_operand.vmem [shape: f32[1,32], index: 2, kind: input, shape index: {}]   ;;  %s1019_s3 = inlined_call_operand.vmem [shape: f32[8,32], index: 3, kind: output, shape index: {0}]   ;;  %s1020_s4 = inlined_call_operand.vmem [shape: f32[1,1,32], index: 4, kind: output, shape index: {1}]   ;;  %s1021_s5 = inlined_call_operand.vmem [shape: f32[1,1,32], index: 5, kind: output, shape index: {2}]  }
   0x1   :  { %v755_v0 = vld [vmem:[%s1016_s1 + $0x40] sm:$0xff]   ;;  %v759_v4 = vld [vmem:[%s1016_s1 + $0x48] sm:$0xff]   ;;  %v763_v8 = vld [vmem:[%s1016_s1 + $0x50] sm:$0xff]   ;;  %vm605_vm3 = vcmask 253952  }
   0x2   :  { %v756_v1 = vld [vmem:[%s1016_s1] sm:$0xff]   ;;  %679 = vmatprep.subr.bf16.mxu0 %v755_v0  ;;  %v760_v5 = vld [vmem:[%s1016_s1 + $0x8] sm:$0xff]   ;;  %v764_v9 = vld [vmem:[%s1016_s1 + $0x10] sm:$0xff]  }
   0x3   :  { %v757_v2 = vld [vmem:[%s1016_s1 + $0xc0] sm:$0xff]   ;;  %680 = vmatpush3.bf16.msra.mxu0 %v756_v1  ;;  %v761_v6 = vld [vmem:[%s1016_s1 + $0xc8] sm:$0xff]   ;;  %v765_v10 = vld [vmem:[%s1016_s1 + $0xd0] sm:$0xff]  }
   0x4   :  { %v758_v3 = vld [vmem:[%s1016_s1 + $0x80] sm:$0xff]   ;;  %701 = vmatprep.subr.bf16.mxu1 %v757_v2  ;;  %681 = vmatprep.subr.bf16.mxu0 %v759_v4  ;;  %v762_v7 = vld [vmem:[%s1016_s1 + $0x88] sm:$0xff]   ;;  %v766_v11 = vld [vmem:[%s1016_s1 + $0x90] sm:$0xff]  }
   0x5   :  { %702 = vmatpush3.bf16.msra.mxu1 %v758_v3  ;;  %v767_v12 = vld [vmem:[%s1016_s1 + $0x58] sm:$0xff]   ;;  %v771_v16 = vld [vmem:[%s1016_s1 + $0x60] sm:$0xff]   ;;  %v775_v20 = vld [vmem:[%s1016_s1 + $0x68] sm:$0xff]  }
   0x6   :  { %703 = vmatprep.subr.bf16.mxu1 %v761_v6  ;;  %v768_v13 = vld [vmem:[%s1016_s1 + $0x18] sm:$0xff]   ;;  %v772_v17 = vld [vmem:[%s1016_s1 + $0x20] sm:$0xff]   ;;  %v776_v21 = vld [vmem:[%s1016_s1 + $0x28] sm:$0xff]  }
   0x7   :  { %682 = vmatpush3.bf16.msra.mxu0 %v760_v5  ;;  %v769_v14 = vld [vmem:[%s1016_s1 + $0xd8] sm:$0xff]   ;;  %v773_v18 = vld [vmem:[%s1016_s1 + $0xe0] sm:$0xff]   ;;  %v777_v22 = vld [vmem:[%s1016_s1 + $0xe8] sm:$0xff]  }
   0x8   :  { %683 = vmatprep.subr.bf16.mxu0 %v763_v8  ;;  %v770_v15 = vld [vmem:[%s1016_s1 + $0x98] sm:$0xff]   ;;  %v774_v19 = vld [vmem:[%s1016_s1 + $0xa0] sm:$0xff]   ;;  %v778_v23 = vld [vmem:[%s1016_s1 + $0xa8] sm:$0xff]  }
   0x9   :  { %704 = vmatpush3.bf16.msra.mxu1 %v762_v7  ;;  %v779_v24 = vld [vmem:[%s1016_s1 + $0x70] sm:$0xff]   ;;  %v783_v28 = vld [vmem:[%s1016_s1 + $0x78] sm:$0xff]   ;;  %v19_v31 = vld [vmem:[%s1017_s0 + $0x8] sm:$0xff] }
   0xa   :  { %705 = vmatprep.subr.bf16.mxu1 %v765_v10  ;;  %v780_v25 = vld [vmem:[%s1016_s1 + $0x30] sm:$0xff]   ;;  %v784_v29 = vld [vmem:[%s1016_s1 + $0x38] sm:$0xff]   ;;  %v26_v32 = vpack.c.bf16 %v19_v31, %v19_v31  ;;  %v18_v34 = vld [vmem:[%s1017_s0] sm:$0xff] }
   0xb   :  { %684 = vmatpush3.bf16.msra.mxu0 %v764_v9  ;;  %v781_v26 = vld [vmem:[%s1016_s1 + $0xf0] sm:$0xff]   ;;  %v785_v30 = vld [vmem:[%s1016_s1 + $0xf8] sm:$0xff]   ;;  %v25_v35 = vpack.c.bf16 %v18_v34, %v18_v34  ;;  %v787_v36 = vld [vmem:[%s1016_s1 + $0x140] sm:$0xff]  }
   0xc   :  { %685 = vmatprep.subr.bf16.mxu0 %v767_v12  ;;  %v782_v27 = vld [vmem:[%s1016_s1 + $0xb0] sm:$0xff]   ;;  %v786_v33 = vld [vmem:[%s1016_s1 + $0xb8] sm:$0xff]   ;;  %467 = vmatprep.mubr.bf16.mxu0 %v26_v32  ;;  %v788_v39 = vld [vmem:[%s1016_s1 + $0x100] sm:$0xff]  }
   0xd   :  { %706 = vmatpush3.bf16.msra.mxu1 %v766_v11  ;;  %v21_v37 = vld [vmem:[%s1017_s0 + $0x18] sm:$0xff]  ;;  %v20_v40 = vld [vmem:[%s1017_s0 + $0x10] sm:$0xff]  ;;  %v789_v42 = vld [vmem:[%s1016_s1 + $0x148] sm:$0xff]  }
   0xe   :  { %707 = vmatprep.subr.bf16.mxu1 %v769_v14  ;;  %v28_v38 = vpack.c.bf16 %v21_v37, %v21_v37  ;;  %v27_v41 = vpack.c.bf16 %v20_v40, %v20_v40  ;;  %v790_v43 = vld [vmem:[%s1016_s1 + $0x108] sm:$0xff]   ;;  %v791_v45 = vld [vmem:[%s1016_s1 + $0x150] sm:$0xff]   ;;  %v793_v47 = vld [vmem:[%s1016_s1 + $0x158] sm:$0xff]  }
   0xf   :  { %686 = vmatpush3.bf16.msra.mxu0 %v768_v13  ;;  %v792_v46 = vld [vmem:[%s1016_s1 + $0x110] sm:$0xff]   ;;  %v794_v48 = vld [vmem:[%s1016_s1 + $0x118] sm:$0xff]   ;;  %v795_v49 = vld [vmem:[%s1016_s1 + $0x160] sm:$0xff]  }
  0x10   :  { %687 = vmatprep.subr.bf16.mxu0 %v771_v16  ;;  %507 = vmatprep.mubr.bf16.mxu1 %v28_v38  ;;  %v796_v50 = vld [vmem:[%s1016_s1 + $0x120] sm:$0xff]   ;;  %v797_v51 = vld [vmem:[%s1016_s1 + $0x168] sm:$0xff]   ;;  %v24_v55 = vld [vmem:[%s1017_s0 + $0x30] sm:$0xff] }
  0x11   :  { %708 = vmatpush3.bf16.msra.mxu1 %v770_v15  ;;  %v803_v52 = vld [vmem:[%s1016_s1 + $0x180] sm:$0xff]   ;;  %v23_v53 = vld [vmem:[%s1017_s0 + $0x28] sm:$0xff]  ;;  %v31_v57 = vpack.c.bf16 %v24_v55, %v24_v55  ;;  %v799_v58 = vld [vmem:[%s1016_s1 + $0x170] sm:$0xff]  }
  0x12   :  { %709 = vmatprep.subr.bf16.mxu1 %v773_v18  ;;  %v30_v54 = vpack.c.bf16 %v23_v53, %v23_v53  ;;  %v798_v56 = vld [vmem:[%s1016_s1 + $0x128] sm:$0xff]   ;;  %v800_v59 = vld [vmem:[%s1016_s1 + $0x130] sm:$0xff]   ;;  %v801_v60 = vld [vmem:[%s1016_s1 + $0x178] sm:$0xff]  }
  0x13   :  { %688 = vmatpush3.bf16.msra.mxu0 %v772_v17  ;;  %v802_v61 = vld [vmem:[%s1016_s1 + $0x138] sm:$0xff]   ;;  %v22_v62 = vld [vmem:[%s1017_s0 + $0x20] sm:$0xff] }
  0x14   :  { %689 = vmatprep.subr.bf16.mxu0 %v775_v20  ;;  %v29_v63 = vpack.c.bf16 %v22_v62, %v22_v62  ;;  %v628_v1 = vld [vmem:[%s1018_s2] ss:$0 sm:$0xff] }
  0x15   :  { %710 = vmatpush3.bf16.msra.mxu1 %v774_v19 }
  0x16   :  { %711 = vmatprep.subr.bf16.mxu1 %v777_v22 }
  0x17   :  { %690 = vmatpush3.bf16.msra.mxu0 %v776_v21 }
  0x18   :  { %691 = vmatprep.subr.bf16.mxu0 %v779_v24 }
  0x19   :  { %712 = vmatpush3.bf16.msra.mxu1 %v778_v23 }
  0x1a   :  { %713 = vmatprep.subr.bf16.mxu1 %v781_v26 }
  0x1b   :  { %692 = vmatpush3.bf16.msra.mxu0 %v780_v25 }
  0x1c   :  { %693 = vmatprep.subr.bf16.mxu0 %v783_v28 }
  0x1d   :  { %714 = vmatpush3.bf16.msra.mxu1 %v782_v27 }
  0x1e   :  { %715 = vmatprep.subr.bf16.mxu1 %v785_v30 }
  0x1f   :  { %694 = vmatpush3.bf16.msra.mxu0 %v784_v29 }
  0x20   :  { %723 = vmatprep.subr.bf16.mxu0 %v787_v36 }
  0x21   :  { %716 = vmatpush3.bf16.msra.mxu1 %v786_v33 }
  0x22   :  { %468 = vmatmul.mubr.bf16.vlgmr.msra.gmra.mrb[0].mxu0 %v25_v35  ;;  %747 = vmatprep.subr.bf16.mxu1 %v804_v44 }
  0x23   :  { %724 = vmatpush3.bf16.msra.mxu0 %v788_v39  ;;  %547 = vmatprep.mubr.bf16.mxu0 %v30_v54 }
  0x24   :  { %508 = vmatmul.mubr.bf16.vlgmr.msra.gmra.mrb[0].mxu1 %v27_v41  ;;  %725 = vmatprep.subr.bf16.mxu0 %v789_v42 }
  0x25   :  { %749 = vmatprep.mubr.msk.bf16.mxu1 %vm805_vm0, %v804_v44  ;;  %748 = vmatpush3.bf16.msra.mxu1 %v803_v52 }
  0x27   :  { %726 = vmatpush3.bf16.msra.mxu0 %v790_v43 }
  0x28   :  { %727 = vmatprep.subr.bf16.mxu0 %v791_v45 }
  0x2b   :  { %728 = vmatpush3.bf16.msra.mxu0 %v792_v46 }
  0x2c   :  { %729 = vmatprep.subr.bf16.mxu0 %v793_v47  ;;  %750 = vmatmul.mubr.msk.bf16.vlgmr.msra.gmra.mrb[4].mxu1 %vm431_vm1, %v31_v57 }
  0x2f   :  { %730 = vmatpush3.bf16.msra.mxu0 %v794_v48 }
  0x30   :  { %731 = vmatprep.subr.bf16.mxu0 %v795_v49 }
  0x33   :  { %732 = vmatpush3.bf16.msra.mxu0 %v796_v50 }
  0x34   :  { %733 = vmatprep.subr.bf16.mxu0 %v797_v51 }
  0x37   :  { %734 = vmatpush3.bf16.msra.mxu0 %v798_v56 }
  0x38   :  { %735 = vmatprep.subr.bf16.mxu0 %v799_v58 }
  0x3b   :  { %736 = vmatpush3.bf16.msra.mxu0 %v800_v59 }
  0x3c   :  { %737 = vmatprep.subr.bf16.mxu0 %v801_v60 }
  0x3f   :  { %738 = vmatpush3.bf16.msra.mxu0 %v802_v61 }
  0x42   :  { %548 = vmatmul.mubr.bf16.vlgmr.msra.gmra.mrb[4].mxu0 %v29_v63 }
  0xf5   :  { %v695_v0 = vpop.f32.mrb[0].mxu0 }
  0xf6   :  { %v696_v2 = vpop.f32.mrb[1].mxu0 }
  0xf7   :  { %v697_v3 = vadd.f32 %v696_v2, %v695_v0  ;;  %v698_v4 = vpop.f32.mrb[2].mxu0  ;;  %v717_v5 = vpop.f32.mrb[0].mxu1 }
  0xf8   :  { %v699_v6 = vpop.f32.mrb[3].mxu0  ;;  %v718_v8 = vpop.f32.mrb[1].mxu1 }
  0xf9   :  { %v470_v7 = vadd.f32 %v697_v3, %v628_v1  ;;  %v719_v9 = vadd.f32 %v718_v8, %v717_v5  ;;  %v720_v10 = vpop.f32.mrb[2].mxu1 }
  0xfa   :  { %v721_v11 = vpop.f32.mrb[3].mxu1 }
  0xfb   :  { %v510_v12 = vadd.f32 %v719_v9, %v470_v7 }
  0xff   :  { %v589_v13 = vpop.f32.mrb[4].mxu1 }
 0x100   :  { %v751_v14 = vpop.f32.mrb[5].mxu1 }
 0x101   :  { %v592_v15 = vpop.f32.mrb[6].mxu1 }
 0x102   :  { %v752_v16 = vpop.f32.mrb[7].mxu1 }
 0x115   :  { %v739_v17 = vpop.f32.mrb[4].mxu0 }
 0x116   :  { %v740_v18 = vpop.f32.mrb[5].mxu0 }
 0x117   :  { %v741_v19 = vadd.f32 %v740_v18, %v739_v17  ;;  %v742_v20 = vpop.f32.mrb[6].mxu0 }
 0x118   :  { %v743_v21 = vpop.f32.mrb[7].mxu0 }
 0x119   :  { %v550_v22 = vadd.f32 %v741_v19, %v510_v12 }
 0x11b   :  { %v590_v23 = vadd.f32 %v589_v13, %v550_v22 }
 0x11d   :  { %v595_v24 = vmax.f32 %v590_v23, 0.0 }
 0x11f   :  { %597 = vst.msk [vmem:[%s1019_s3] sm:$0xff] %vm596_vm2, %v595_v24  ;;  %v598_v25 = vsel %vm596_vm2, %v595_v24, 0.0  ;;  %v607_v26 = vmul.f32 %v595_v24, %v595_v24 }
 0x120   :  { %v599_v27 = vrot.slane %v598_v25, 4 }
 0x121   :  { %v608_v28 = vsel %vm596_vm2, %v607_v26, 0.0 }
 0x122   :  { %v600_v29 = vadd.f32 %v599_v27, %v598_v25  ;;  %v609_v30 = vrot.slane %v608_v28, 4 }
 0x124   :  { %v601_v31 = vrot.slane %v600_v29, 2  ;;  %v610_v32 = vadd.f32 %v609_v30, %v608_v28 }
 0x126   :  { %v602_v33 = vadd.f32 %v601_v31, %v600_v29  ;;  %v611_v34 = vrot.slane %v610_v32, 2 }
 0x128   :  { %v603_v35 = vrot.slane %v602_v33, 1  ;;  %v612_v36 = vadd.f32 %v611_v34, %v610_v32 }
 0x12a   :  { %v604_v37 = vadd.f32 %v603_v35, %v602_v33  ;;  %v613_v38 = vrot.slane %v612_v36, 1 }
 0x12c   :  { %606 = vst.msk [vmem:[%s1020_s4] sm:$0x1] %vm605_vm3, %v604_v37  ;;  %v614_v39 = vadd.f32 %v613_v38, %v612_v36 }
 0x12e   :  { %615 = vst.msk [vmem:[%s1021_s5] sm:$0x1] %vm605_vm3, %v614_v39 }

// kernel: fc_forward.5
= control target key start
LH: loop header
LB: loop body
LE: loop exit
PB: predicated region body
PF: predicated region fallthrough
CT: control target
= control target key end

     0   :  { %vm29_vm0 = vcmask 1041408   ;;  %v183_v2 = vmov 0.0|0.0   ;;  %vm184_vm1 = vmmov 1   ;;  %vm185_vm3 = vmmov 0   ;;  %s232_s0 = inlined_call_operand.vmem [shape: f32[8,10], index: 0, kind: input, shape index: {}]   ;;  %s233_s1 = inlined_call_operand.vmem [shape: f32[10,128], index: 1, kind: input, shape index: {}]   ;;  %s234_s2 = inlined_call_operand.vmem [shape: f32[1,128], index: 2, kind: input, shape index: {}]   ;;  %s235_s3 = inlined_call_operand.hbm [shape: f32[8,128], index: 3, kind: output, shape index: {}]  }
   0x1   :  { %v16_v0 = vld [vmem:[%s233_s1] sm:$0xff]  ;;  %v17_v1 = vld [vmem:[%s233_s1 + $0x8] sm:$0x3]  ;;  %146 = vmatprep.subr.bf16.mxu0 %v183_v2  ;;  %vm148_vm2 = vmpackc.low %vm29_vm0, %vm184_vm1  ;;  %v186_v4 = vmov 0.0  }
   0x2   :  { %v147_v3 = vpack.c.bf16 %v17_v1, %v16_v0  ;;  %143 = vmatprep.mubr.msk.f32.mxu0 %vm185_vm3, %v186_v4 }
   0x3   :  { %8 = vsyncpa [#allocation3], 0  ;;  %v15_v5 = vld [vmem:[%s232_s0] sm:$0xff]  ;;  %vm25_vm4 = vcmask 80896   ;;  %v103_v6 = vlaneseq  ;;  %s187_s0 = smov [#allocation2]  }
   0x4   :  { %149 = vmatpush3.bf16.msk.msra.mxu0 %vm148_vm2, %v147_v3  ;;  %v133_v8 = vld [vmem:[%s234_s2] ss:$0 sm:$0xff]  ;;  %s125_s19 = sshll.u32 %s187_s0, 4  ;;  %s126_s19 = int_to_ptr.vmem [resolvable:$true] %s125_s19 }
   0x5   :  { %v104_v7 = vand.u32 127, %v103_v6  ;;  %s159_s2 = scalar_lea.vmem %s126_s19, 128  ;;  %p164_p1 = scmp.lt.s32.totalorder %s126_s19, %s126_s19 }
   0x6   :  { %p160_p0 = scmp.ne.s32.totalorder %s126_s19, %s159_s2  ;;  %p165_p2 = scmp.lt.s32.totalorder %s159_s2, %s159_s2 }
   0x7   :  { %144 = vmatmul.mubr.msk.f32.vlgmr.msra.gmra.mrb[0].mxu0 %vm25_vm4, %v15_v5  ;;  %vm105_vm5 = vcmp.lt.s32.totalorder %v104_v7, 10 }
   0x8   :  { %p166_p3 = por %p165_p2, %p164_p1 }
   0xa   :  { %p167_p4 = pnand %p166_p3, %p160_p0 }
  0xda   :  { %v99_v9 = vpop.f32.mrb[0].mxu0 }
  0xdb   :  { %v100_v10 = vadd.f32 %v133_v8, %v99_v9  ;;  %v145_v11 = vpop.f32.mrb[1].mxu0 }
  0xdd   :  { %v106_v12 = vsel %vm105_vm5, %v100_v10, -inf }
  0xde   :  { %107 = vmax.xlane.f32.xlu0 %v106_v12 }
 0x16b   :  { %v108_v13 = vpop.xlane.xlu0 %107 }
 0x16c   :  { %v109_v14 = vsub.f32 %v106_v12, %v108_v13  ;;  %v114_v19 = vsub.f32 %v100_v10, %v108_v13 }
 0x16e   :  { %v110_v15 = vmul.f32 1.442695, %v109_v14 }
 0x170   :  { %155 = vpow2.f32 %v110_v15 }
 0x17a   :  { %v156_v16 = vpop.eup %155 }
 0x17b   :  { %112 = vadd.xlane.f32.xlu0 %v156_v16 }
 0x208   :  { %v113_v17 = vpop.xlane.xlu0 %112 }
 0x209   :  { %157 = vlog2.f32 %v113_v17 }
 0x213   :  { %v158_v18 = vpop.eup %157 }
 0x214   :  { %v116_v20 = vmul.f32 0.6931472, %v158_v18 }
 0x216   :  { %v117_v21 = vsub.f32 %v114_v19, %v116_v20 }
 0x218   :  { %118 = vst [vmem:[#allocation2] sm:$0xff] %v117_v21 }
 0x219   :  { %170 = shalt.err (!%p167_p4)
}
 0x21a   :  { %s171_s22 = scalar_lea.hbm %s235_s3, 128 }
 0x21b   :  { %p172_p5 = scmp.ne.s32.totalorder %s235_s3, %s171_s22  ;;  %p175_p6 = scmp.lt.u32.totalorder %s171_s22, %s235_s3 }
 0x21d   :  { %p177_p7 = pnand %p175_p6, %p172_p5 }
 0x21f   :  { %180 = shalt.err (!%p177_p7)
}
 0x220   :  { %128 = dma.vmem_to_hbm [thread:$0]  %s126_s19, 128, %s235_s3, [#allocation3]  }
 0x221   :  { %181 = dma.done.wait [#allocation3], 128  }
 0x222   :  { %182 = vsyncadd [#allocation3], 4294967168 }
 0x223   :  { %132 = vsyncpa [#allocation3], 1 }

</bundles_post_ra>
